<compile_context>
chip_gen: v7x
topology: tpu7x:2x2x1
jax: 0.10.0
libtpu: 0.0.40
codegen_flags: <defaults>
</compile_context>

<pallas_src>
import jax
import jax.numpy as jnp
from jax.experimental import pallas as pl
from jax.experimental.pallas import tpu as pltpu


EMBED_DIM = 32
IN_FEATURES = 2048
HIDDEN = 128


def _projection_kernel(x_ref, w1q_ref, s1_b1_ref, w2a_ref, w2b_b2_ref,
                       add_ref, o_ref):
    # fc1: int8 weight (storage only) -> bf16 on the VPU (exact for |q|<=127),
    # bf16 x bf16 -> f32 on the MXU, per-output-channel dequant scale applied
    # to the f32 accumulator.  Dropout(0.5) is identity at inference.
    x_bf16 = x_ref[...].astype(jnp.bfloat16)
    w1_bf16 = w1q_ref[...].astype(jnp.bfloat16)
    acc = jnp.dot(x_bf16, w1_bf16, preferred_element_type=jnp.float32)

    scale = s1_b1_ref[0:1, :]          # (1, 128) per-output-channel dequant scale
    b1 = s1_b1_ref[1:2, :]             # (1, 128) fc1 bias
    h = jnp.maximum(acc * scale + b1, 0.0)

    # fc2 over the virtual concat [h, add_variable]:
    #   out = h @ W2[:, :128].T + add_var * W2[:, 128] + b2
    out = jnp.dot(h.astype(jnp.bfloat16), w2a_ref[...],
                  preferred_element_type=jnp.float32)
    w2b = w2b_b2_ref[0:1, :]           # (1, 32) add_variable column of W2
    b2 = w2b_b2_ref[1:2, :]            # (1, 32) fc2 bias
    out = out + add_ref[...] * w2b + b2    # (B,1)*(1,32) broadcast, vectorized
    o_ref[...] = out.astype(o_ref.dtype)   # single full-tile store


def prepare_params(params):
    """One-time weight prep hoisted out of the per-call path.

    PyTorch Linear stores weight as (out, in); we store the transposed
    (in, out) layouts, weight-only int8-quantize fc1 with a per-output-channel
    f32 scale, split fc2 into the h-part and the add_variable column, cast the
    fc2 h-part to bf16, and pack small vectors into shared VMEM blocks.
    """
    w1, b1, w2, b2 = params["w1"], params["b1"], params["w2"], params["b2"]

    w1_t = w1.T.astype(jnp.float32)                       # (2048, 128)
    max_abs = jnp.max(jnp.abs(w1_t), axis=0, keepdims=True)   # (1, 128)
    scale = jnp.maximum(max_abs, 1e-30) / 127.0               # (1, 128)
    w1_q = jnp.clip(jnp.round(w1_t / scale), -127.0, 127.0).astype(jnp.int8)

    w2_t = w2.T                                           # (129, 32)
    prepared = {
        "w1_q": w1_q,                                     # (2048, 128) int8
        # row 0 = dequant scale, row 1 = fc1 bias
        "s1_b1": jnp.concatenate(
            [scale, b1.reshape(1, HIDDEN).astype(jnp.float32)], axis=0
        ).astype(jnp.float32),                            # (2, 128)
        "w2a": w2_t[:HIDDEN, :].astype(jnp.bfloat16),     # (128, 32) bf16
        # row 0 = w2 column for add_variable, row 1 = fc2 bias
        "w2b_b2": jnp.concatenate(
            [w2_t[HIDDEN:HIDDEN + 1, :], b2.reshape(1, EMBED_DIM)], axis=0
        ).astype(jnp.float32),                            # (2, 32)
    }
    return jax.tree_util.tree_map(jax.block_until_ready, prepared)


def projection_forward(x, add_variable, prepared):
    """x: (B, C, H, W) float32; add_variable: (B,) float32."""
    B = x.shape[0]
    x_flat = x.reshape(B, -1)            # (B, 2048), matches torch.flatten (C,H,W)
    assert x_flat.shape[1] == IN_FEATURES
    add_col = add_variable.reshape(B, 1).astype(jnp.float32)

    full = lambda shape: pl.BlockSpec(shape, lambda: (0,) * len(shape))

    bytes_accessed = (
        B * IN_FEATURES * 4            # x (f32)
        + IN_FEATURES * HIDDEN * 1     # w1 (int8)
        + 2 * HIDDEN * 4               # scale + b1
        + HIDDEN * EMBED_DIM * 2       # w2a (bf16)
        + 2 * EMBED_DIM * 4            # w2b + b2
        + B * 4                        # add column
        + B * EMBED_DIM * 4            # output
    )
    cost = pl.CostEstimate(
        flops=2 * B * IN_FEATURES * HIDDEN + 2 * B * HIDDEN * EMBED_DIM,
        transcendentals=0,
        bytes_accessed=bytes_accessed,
    )

    out = pl.pallas_call(
        _projection_kernel,
        out_shape=jax.ShapeDtypeStruct((B, EMBED_DIM), jnp.float32),
        grid=(),
        in_specs=[
            full((B, IN_FEATURES)),                       # x (f32, cast in-kernel)
            full((IN_FEATURES, HIDDEN)),                  # w1 (int8)
            full((2, HIDDEN)),                            # [scale; b1]
            full((HIDDEN, EMBED_DIM)),                    # w2a (bf16)
            full((2, EMBED_DIM)),                         # [w2b; b2]
            full((B, 1)),                                 # add_variable column
        ],
        out_specs=full((B, EMBED_DIM)),
        compiler_params=pltpu.CompilerParams(vmem_limit_bytes=4 << 20),
        cost_estimate=cost,
    )(x_flat, prepared["w1_q"], prepared["s1_b1"], prepared["w2a"],
      prepared["w2b_b2"], add_col)
    return out


def init_params(key):
    """Deterministic init, PyTorch-Linear-style uniform(-1/sqrt(fan_in), +)."""
    k1, k2, k3, k4 = jax.random.split(key, 4)
    lim1 = 1.0 / jnp.sqrt(float(IN_FEATURES))
    lim2 = 1.0 / jnp.sqrt(float(HIDDEN + 1))
    return {
        "w1": jax.random.uniform(k1, (HIDDEN, IN_FEATURES), jnp.float32,
                                 -lim1, lim1),
        "b1": jax.random.uniform(k2, (HIDDEN,), jnp.float32, -lim1, lim1),
        "w2": jax.random.uniform(k3, (EMBED_DIM, HIDDEN + 1), jnp.float32,
                                 -lim2, lim2),
        "b2": jax.random.uniform(k4, (EMBED_DIM,), jnp.float32, -lim2, lim2),
    }


def reference_forward(x, add_variable, params):
    """Pure-JAX f32 reference mirroring the PyTorch forward (eval mode)."""
    B = x.shape[0]
    xf = x.reshape(B, -1)
    h = jnp.maximum(xf @ params["w1"].T + params["b1"], 0.0)
    cat = jnp.concatenate([h, add_variable[:, None]], axis=1)
    return cat @ params["w2"].T + params["b2"]


if __name__ == "__main__":
    key = jax.random.PRNGKey(0)
    kx, ka, kp = jax.random.split(key, 3)

    # (B, C, H, W) = (2, 8, 16, 16) -> flattens to (2, 2048)
    x = jax.random.normal(kx, (2, 8, 16, 16), jnp.float32)
    add_variable = jax.random.normal(ka, (2,), jnp.float32)
    params = init_params(kp)

    prepared = prepare_params(params)       # one-time weight prep (hoisted)
    proj = jax.jit(projection_forward)

    out = proj(x, add_variable, prepared)
    out = jax.block_until_ready(out)

    ref = reference_forward(x, add_variable, params)
    assert out.shape == (2, EMBED_DIM)
    # int8 weight-only quant + bf16 activations -> loosened tolerance vs. the
    # exact f32 reference (observed error is ~1e-3; bound is conservative).
    assert jnp.allclose(out, ref, atol=5e-2, rtol=5e-2)

    print("KERNEL_OK")
</pallas_src>

<mosaic_0001>
module attributes {stable_mosaic.version = 11 : i64} {
  func.func @_projection_kernel(%arg0: memref<2x2048xf32, #tpu.memory_space<vmem>>, %arg1: memref<2048x128xi8, #tpu.memory_space<vmem>>, %arg2: memref<2x128xf32, #tpu.memory_space<vmem>>, %arg3: memref<128x32xbf16, #tpu.memory_space<vmem>>, %arg4: memref<2x32xf32, #tpu.memory_space<vmem>>, %arg5: memref<2x1xf32, #tpu.memory_space<vmem>>, %arg6: memref<2x32xf32, #tpu.memory_space<vmem>>) attributes {dimension_semantics = [], scalar_prefetch = 0 : i64, scratch_operands = 0 : i64, tpu.core_type = #tpu.core_type<tc>} {
    %c0 = arith.constant 0 : index
    %c0_0 = arith.constant 0 : index
    %0 = vector.load %arg0[%c0, %c0_0] : memref<2x2048xf32, #tpu.memory_space<vmem>>, vector<2x2048xf32>
    %1 = arith.truncf %0 : vector<2x2048xf32> to vector<2x2048xbf16>
    %c0_1 = arith.constant 0 : index
    %c0_2 = arith.constant 0 : index
    %2 = vector.load %arg1[%c0_1, %c0_2] : memref<2048x128xi8, #tpu.memory_space<vmem>>, vector<2048x128xi8>
    %3 = arith.sitofp %2 : vector<2048x128xi8> to vector<2048x128xbf16>
    %cst = arith.constant dense<0.000000e+00> : vector<2x128xf32>
    %4 = tpu.matmul %1, %3, %cst {dimension_numbers = #tpu.dot_dimension_numbers<[1], [0], [0], [1], [0, 0, 1, 1], [], []>} : vector<2x2048xbf16>, vector<2048x128xbf16>, vector<2x128xf32> -> vector<2x128xf32>
    %c0_3 = arith.constant 0 : index
    %c0_4 = arith.constant 0 : index
    %5 = vector.load %arg2[%c0_3, %c0_4] : memref<2x128xf32, #tpu.memory_space<vmem>>, vector<1x128xf32>
    %c1 = arith.constant 1 : index
    %c0_5 = arith.constant 0 : index
    %6 = vector.load %arg2[%c1, %c0_5] : memref<2x128xf32, #tpu.memory_space<vmem>>, vector<1x128xf32>
    %7 = vector.broadcast %5 : vector<1x128xf32> to vector<2x128xf32>
    %8 = arith.mulf %4, %7 : vector<2x128xf32>
    %9 = vector.broadcast %6 : vector<1x128xf32> to vector<2x128xf32>
    %10 = arith.addf %8, %9 : vector<2x128xf32>
    %cst_6 = arith.constant 0.000000e+00 : f32
    %11 = vector.broadcast %cst_6 : f32 to vector<2x128xf32>
    %12 = arith.maximumf %10, %11 : vector<2x128xf32>
    %13 = arith.truncf %12 : vector<2x128xf32> to vector<2x128xbf16>
    %c0_7 = arith.constant 0 : index
    %c0_8 = arith.constant 0 : index
    %14 = vector.load %arg3[%c0_7, %c0_8] : memref<128x32xbf16, #tpu.memory_space<vmem>>, vector<128x32xbf16>
    %cst_9 = arith.constant dense<0.000000e+00> : vector<2x32xf32>
    %15 = tpu.matmul %13, %14, %cst_9 {dimension_numbers = #tpu.dot_dimension_numbers<[1], [0], [0], [1], [0, 0, 1, 1], [], []>} : vector<2x128xbf16>, vector<128x32xbf16>, vector<2x32xf32> -> vector<2x32xf32>
    %c0_10 = arith.constant 0 : index
    %c0_11 = arith.constant 0 : index
    %16 = vector.load %arg4[%c0_10, %c0_11] : memref<2x32xf32, #tpu.memory_space<vmem>>, vector<1x32xf32>
    %c1_12 = arith.constant 1 : index
    %c0_13 = arith.constant 0 : index
    %17 = vector.load %arg4[%c1_12, %c0_13] : memref<2x32xf32, #tpu.memory_space<vmem>>, vector<1x32xf32>
    %c0_14 = arith.constant 0 : index
    %c0_15 = arith.constant 0 : index
    %18 = vector.load %arg5[%c0_14, %c0_15] : memref<2x1xf32, #tpu.memory_space<vmem>>, vector<2x1xf32>
    %19 = vector.broadcast %18 : vector<2x1xf32> to vector<2x32xf32>
    %20 = vector.broadcast %16 : vector<1x32xf32> to vector<2x32xf32>
    %21 = arith.mulf %19, %20 : vector<2x32xf32>
    %22 = arith.addf %15, %21 : vector<2x32xf32>
    %23 = vector.broadcast %17 : vector<1x32xf32> to vector<2x32xf32>
    %24 = arith.addf %22, %23 : vector<2x32xf32>
    %c0_16 = arith.constant 0 : index
    %c0_17 = arith.constant 0 : index
    %25 = vector.load %arg6[%c0_16, %c0_17] : memref<2x32xf32, #tpu.memory_space<vmem>>, vector<2x32xf32>
    tpu.vector_store %arg6[%c0_16, %c0_17], %24 {strides = array<i32>} : memref<2x32xf32, #tpu.memory_space<vmem>>, vector<2x32xf32>,
    return
  }
}

</mosaic_0001>

<bundles_post_ra>
// kernel: projection_forward.1
= control target key start
LH: loop header
LB: loop body
LE: loop exit
PB: predicated region body
PF: predicated region fallthrough
CT: control target
= control target key end

     0   :  { %11 = vsyncpa [#allocation3], 0  ;;  %s1274_s0 = inlined_call_operand.vmem [shape: f32[2,2048], index: 0, kind: input, shape index: {}]   ;;  %s1275_s1 = inlined_call_operand.hbm [shape: s8[2048,128], index: 1, kind: input, shape index: {}]   ;;  %s1276_s2 = inlined_call_operand.vmem [shape: f32[2,128], index: 2, kind: input, shape index: {}]   ;;  %s1277_s3 = inlined_call_operand.vmem [shape: bf16[128,32], index: 3, kind: input, shape index: {}]   ;;  %s1278_s4 = inlined_call_operand.vmem [shape: f32[2,32], index: 4, kind: input, shape index: {}]   ;;  %s1279_s5 = inlined_call_operand.vmem [shape: f32[2,1], index: 5, kind: input, shape index: {}]   ;;  %s1280_s6 = inlined_call_operand.hbm [shape: f32[2,32], index: 6, kind: output, shape index: {}]  }
   0x1   :  { %12 = vsyncpa [#allocation4], 0  ;;  %s1098_s21 = smov [#allocation2]   ;;  %s1050_s25 = scalar_lea.hbm %s1275_s1, 8192 }
   0x2   :  { %s20_s22 = sshll.u32 %s1098_s21, 4  ;;  %p1051_p0 = scmp.ne.s32.totalorder %s1275_s1, %s1050_s25  ;;  %s21_s22 = int_to_ptr.vmem [resolvable:$true] %s20_s22 }
   0x3   :  { %p1054_p1 = scmp.lt.u32.totalorder %s1050_s25, %s1275_s1 }
   0x5   :  { %p1056_p2 = pnand %p1054_p1, %p1051_p0 }
   0x7   :  { %1059 = shalt.err (!%p1056_p2)
}
   0x8   :  { %s1060_s30 = scalar_lea.vmem %s21_s22, 8192  ;;  %p1065_p4 = scmp.lt.s32.totalorder %s21_s22, %s21_s22 }
   0x9   :  { %p1061_p3 = scmp.ne.s32.totalorder %s21_s22, %s1060_s30  ;;  %p1066_p5 = scmp.lt.s32.totalorder %s1060_s30, %s1060_s30 }
   0xb   :  { %p1067_p6 = por %p1066_p5, %p1065_p4 }
   0xd   :  { %p1068_p7 = pnand %p1067_p6, %p1061_p3 }
   0xf   :  { %1071 = shalt.err (!%p1068_p7)
}
  0x10   :  { %s1099_s7 = smov 128   ;;  %s1100_s8 = smov 8  }
  0x11   :  { %26 = dma.hbm_to_vmem [thread:$0]  %s1275_s1, 8192, %s21_s22, [#allocation3], %s1099_s7, %s1099_s7, %s1100_s8  }
  0x12   :  { %1094 = dma.done.wait [#allocation3], 8192  }
  0x13   :  { %1095 = vsyncadd [#allocation3], 4294959104  ;;  %v1101_v0 = vmov 1983009808   ;;  %v51_v2 = vlaneseq  ;;  %v151_v3 = vld [vmem:[#allocation2 + $0x20] sm:$0xff]  ;;  %v152_v15 = vld [vmem:[#allocation2 + $0x28] sm:$0xff] }
  0x14   :  { %v49_v1 = vunpack.c.l.s4 %v1101_v0  ;;  %v159_v4 = vld [vmem:[#allocation2 + $0x60] sm:$0xff]  ;;  %v219_v8 = vunpack.c.l.s8.bf16 %v151_v3  ;;  %v220_v9 = vunpack.c.h.s8.bf16 %v151_v3  ;;  %v160_v16 = vld [vmem:[#allocation2 + $0x68] sm:$0xff]  ;;  %v221_v19 = vunpack.c.l.s8.bf16 %v152_v15  ;;  %v153_v31 = vld [vmem:[#allocation2 + $0x30] sm:$0xff]  ;;  %s1105_s16 = smov [#allocation5]  }
  0x15   :  { %v147_v5 = vld [vmem:[#allocation2] sm:$0xff]  ;;  %v52_v7 = vshrl.u32 %v51_v2, 7  ;;  %v235_v10 = vunpack.c.l.s8.bf16 %v159_v4  ;;  %v236_v11 = vunpack.c.h.s8.bf16 %v159_v4  ;;  %v237_v20 = vunpack.c.l.s8.bf16 %v160_v16  ;;  %v148_v21 = vld [vmem:[#allocation2 + $0x8] sm:$0xff]  ;;  %v161_v32 = vld [vmem:[#allocation2 + $0x70] sm:$0xff]  ;;  %s803_s17 = sshll.u32 %s1105_s16, 4  ;;  %s804_s17 = int_to_ptr.vmem [resolvable:$true] %s803_s17 }
  0x16   :  { %v50_v6 = vunpack.c.0.s8 %v49_v1  ;;  %v155_v12 = vld [vmem:[#allocation2 + $0x40] sm:$0xff]  ;;  %v211_v13 = vunpack.c.l.s8.bf16 %v147_v5  ;;  %824 = vmatprep.subr.bf16.mxu0 %v219_v8  ;;  %v212_v17 = vunpack.c.h.s8.bf16 %v147_v5  ;;  %v156_v22 = vld [vmem:[#allocation2 + $0x48] sm:$0xff]  ;;  %v213_v25 = vunpack.c.l.s8.bf16 %v148_v21  ;;  %v149_v39 = vld [vmem:[#allocation2 + $0x10] sm:$0xff]  ;;  %p1077_p9 = scmp.lt.s32.totalorder %s804_s17, %s804_s17 }
  0x17   :  { %v227_v14 = vunpack.c.l.s8.bf16 %v155_v12  ;;  %846 = vmatprep.subr.bf16.mxu1 %v235_v10  ;;  %v228_v18 = vunpack.c.h.s8.bf16 %v155_v12  ;;  %v39_v24 = vld [vmem:[%s1274_s0] sm:$0xff]  ;;  %v229_v26 = vunpack.c.l.s8.bf16 %v156_v22  ;;  %v222_v27 = vunpack.c.h.s8.bf16 %v152_v15  ;;  %v157_v40 = vld [vmem:[#allocation2 + $0x50] sm:$0xff]  ;;  %v154_v48 = vld [vmem:[#allocation2 + $0x38] sm:$0xff] }
  0x18   :  { %825 = vmatpush3.bf16.msra.mxu0 %v211_v13  ;;  %v1153_v23 = vsub.s32 %v50_v6, %v52_v7  ;;  %v238_v28 = vunpack.c.h.s8.bf16 %v160_v16  ;;  %v47_v30 = vcombine.high %v39_v24, %v39_v24  ;;  %v214_v35 = vunpack.c.h.s8.bf16 %v148_v21  ;;  %v162_v49 = vld [vmem:[#allocation2 + $0x78] sm:$0xff]  ;;  %v40_v50 = vld [vmem:[%s1274_s0 + $0x8] sm:$0xff]  ;;  %v167_v60 = vld [vmem:[#allocation2 + $0xa0] sm:$0xff] }
  0x19   :  { %847 = vmatpush3.bf16.msra.mxu1 %v227_v14  ;;  %826 = vmatprep.subr.bf16.mxu0 %v220_v9  ;;  %v230_v36 = vunpack.c.h.s8.bf16 %v156_v22  ;;  %v223_v37 = vunpack.c.l.s8.bf16 %v153_v31  ;;  %v239_v38 = vunpack.c.l.s8.bf16 %v161_v32  ;;  %v215_v44 = vunpack.c.l.s8.bf16 %v149_v39  ;;  %v150_v55 = vld [vmem:[#allocation2 + $0x18] sm:$0xff]  ;;  %v175_v61 = vld [vmem:[#allocation2 + $0xe0] sm:$0xff]  ;;  %v168_v16 = vld [vmem:[#allocation2 + $0xa8] sm:$0xff] }
  0x1a   :  { %848 = vmatprep.subr.bf16.mxu1 %v236_v11  ;;  %v1159_v29 = vrot.slane %v39_v24, %v1153_v23  ;;  %v1164_v34 = vrot.slane %v47_v30, %v1153_v23  ;;  %v231_v45 = vunpack.c.l.s8.bf16 %v157_v40  ;;  %v224_v46 = vunpack.c.h.s8.bf16 %v153_v31  ;;  %v158_v56 = vld [vmem:[#allocation2 + $0x58] sm:$0xff]  ;;  %v163_v6 = vld [vmem:[#allocation2 + $0x80] sm:$0xff]  ;;  %v169_v31 = vld [vmem:[#allocation2 + $0xb0] sm:$0xff] }
  0x1b   :  { %v240_v47 = vunpack.c.h.s8.bf16 %v161_v32  ;;  %v216_v51 = vunpack.c.h.s8.bf16 %v149_v39  ;;  %v232_v52 = vunpack.c.h.s8.bf16 %v157_v40  ;;  %v225_v53 = vunpack.c.l.s8.bf16 %v154_v48  ;;  %v171_v7 = vld [vmem:[#allocation2 + $0xc0] sm:$0xff]  ;;  %v177_v32 = vld [vmem:[#allocation2 + $0xf0] sm:$0xff] }
  0x1c   :  { %827 = vmatpush3.bf16.msra.mxu0 %v212_v17  ;;  %v62_v33 = vcombine.high %v1159_v29, %v1159_v29  ;;  %v63_v42 = vcombine.high %v1164_v34, %v1164_v34  ;;  %v241_v54 = vunpack.c.l.s8.bf16 %v162_v49  ;;  %v64_v57 = vcombine.high %v40_v50, %v40_v50  ;;  %v176_v17 = vld [vmem:[#allocation2 + $0xe8] sm:$0xff] }
  0x1d   :  { %849 = vmatpush3.bf16.msra.mxu1 %v228_v18  ;;  %828 = vmatprep.subr.bf16.mxu0 %v221_v19  ;;  %v217_v58 = vunpack.c.l.s8.bf16 %v150_v55  ;;  %v233_v59 = vunpack.c.l.s8.bf16 %v158_v56  ;;  %v226_v62 = vunpack.c.h.s8.bf16 %v154_v48  ;;  %v242_v63 = vunpack.c.h.s8.bf16 %v162_v49 }
  0x1e   :  { %850 = vmatprep.subr.bf16.mxu1 %v237_v20  ;;  %v132_v41 = vpack.c.bf16 %v62_v33, %v62_v33  ;;  %v134_v43 = vpack.c.bf16 %v63_v42, %v63_v42  ;;  %v1172_v0 = vrot.slane %v40_v50, %v1153_v23  ;;  %v1175_v1 = vrot.slane %v64_v57, %v1153_v23  ;;  %v166_v50 = vld [vmem:[#allocation2 + $0x98] sm:$0xff]  ;;  %v183_v57 = vld [vmem:[#allocation2 + $0x120] sm:$0xff] }
  0x1f   :  { %v218_v2 = vunpack.c.h.s8.bf16 %v150_v55  ;;  %v234_v3 = vunpack.c.h.s8.bf16 %v158_v56  ;;  %v251_v4 = vunpack.c.l.s8.bf16 %v167_v60  ;;  %v267_v5 = vunpack.c.l.s8.bf16 %v175_v61 }
  0x20   :  { %829 = vmatpush3.bf16.msra.mxu0 %v213_v25  ;;  %371 = vmatprep.mubr.bf16.mxu0 %v132_v41  ;;  %v79_v8 = vcombine.high %v1172_v0, %v1172_v0  ;;  %v80_v9 = vcombine.high %v1175_v1, %v1175_v1  ;;  %v131_v10 = vpack.c.bf16 %v1159_v29, %v1159_v29  ;;  %v243_v12 = vunpack.c.l.s8.bf16 %v163_v6  ;;  %v164_v25 = vld [vmem:[#allocation2 + $0x88] sm:$0xff] }
  0x21   :  { %851 = vmatpush3.bf16.msra.mxu1 %v229_v26  ;;  %830 = vmatprep.subr.bf16.mxu0 %v222_v27  ;;  %v133_v11 = vpack.c.bf16 %v1164_v34, %v1164_v34  ;;  %v259_v13 = vunpack.c.l.s8.bf16 %v171_v7  ;;  %v252_v14 = vunpack.c.h.s8.bf16 %v167_v60  ;;  %v268_v15 = vunpack.c.h.s8.bf16 %v175_v61  ;;  %v172_v26 = vld [vmem:[#allocation2 + $0xc8] sm:$0xff] }
  0x22   :  { %852 = vmatprep.subr.bf16.mxu1 %v238_v28  ;;  %411 = vmatprep.mubr.bf16.mxu1 %v134_v43  ;;  %v136_v18 = vpack.c.bf16 %v79_v8, %v79_v8  ;;  %v138_v19 = vpack.c.bf16 %v80_v9, %v80_v9  ;;  %v244_v20 = vunpack.c.h.s8.bf16 %v163_v6  ;;  %v260_v21 = vunpack.c.h.s8.bf16 %v171_v7  ;;  %v170_v43 = vld [vmem:[#allocation2 + $0xb8] sm:$0xff] }
  0x23   :  { %v253_v22 = vunpack.c.l.s8.bf16 %v168_v16  ;;  %v269_v24 = vunpack.c.l.s8.bf16 %v176_v17  ;;  %v245_v27 = vunpack.c.l.s8.bf16 %v164_v25  ;;  %v261_v28 = vunpack.c.l.s8.bf16 %v172_v26 }
  0x24   :  { %831 = vmatpush3.bf16.msra.mxu0 %v214_v35  ;;  %v254_v29 = vunpack.c.h.s8.bf16 %v168_v16  ;;  %v270_v30 = vunpack.c.h.s8.bf16 %v176_v17  ;;  %v246_v33 = vunpack.c.h.s8.bf16 %v164_v25  ;;  %v262_v34 = vunpack.c.h.s8.bf16 %v172_v26  ;;  %v185_v26 = vld [vmem:[#allocation2 + $0x130] sm:$0xff] }
  0x25   :  { %853 = vmatpush3.bf16.msra.mxu1 %v230_v36  ;;  %832 = vmatprep.subr.bf16.mxu0 %v223_v37  ;;  %v255_v35 = vunpack.c.l.s8.bf16 %v169_v31  ;;  %v271_v36 = vunpack.c.l.s8.bf16 %v177_v32  ;;  %v165_v37 = vld [vmem:[#allocation2 + $0x90] sm:$0xff]  ;;  %v256_v41 = vunpack.c.h.s8.bf16 %v169_v31  ;;  %v272_v42 = vunpack.c.h.s8.bf16 %v177_v32 }
  0x26   :  { %854 = vmatprep.subr.bf16.mxu1 %v239_v38  ;;  %v173_v38 = vld [vmem:[#allocation2 + $0xd0] sm:$0xff]  ;;  %v247_v39 = vunpack.c.l.s8.bf16 %v165_v37  ;;  %v257_v48 = vunpack.c.l.s8.bf16 %v170_v43  ;;  %v258_v55 = vunpack.c.h.s8.bf16 %v170_v43  ;;  %v250_v61 = vunpack.c.h.s8.bf16 %v166_v50 }
  0x27   :  { %v263_v40 = vunpack.c.l.s8.bf16 %v173_v38  ;;  %v135_v7 = vpack.c.bf16 %v1172_v0, %v1172_v0  ;;  %v137_v8 = vpack.c.bf16 %v1175_v1, %v1175_v1  ;;  %v181_v32 = vld [vmem:[#allocation2 + $0x110] sm:$0xff]  ;;  %vm1103_vm0 = vmmov 0  }
  0x28   :  { %833 = vmatpush3.bf16.msra.mxu0 %v215_v44  ;;  %v178_v44 = vld [vmem:[#allocation2 + $0xf8] sm:$0xff]  ;;  %vm795_vm1 = vcmask 254976  }
  0x29   :  { %855 = vmatpush3.bf16.msra.mxu1 %v231_v45  ;;  %834 = vmatprep.subr.bf16.mxu0 %v224_v46  ;;  %v41_v45 = vld [vmem:[%s1274_s0 + $0x10] sm:$0xff]  ;;  %v248_v46 = vunpack.c.h.s8.bf16 %v165_v37  ;;  %v273_v49 = vunpack.c.l.s8.bf16 %v178_v44  ;;  %v274_v56 = vunpack.c.h.s8.bf16 %v178_v44 }
  0x2a   :  { %856 = vmatprep.subr.bf16.mxu1 %v240_v47  ;;  %v264_v47 = vunpack.c.h.s8.bf16 %v173_v38  ;;  %v186_v38 = vld [vmem:[#allocation2 + $0x138] sm:$0xff] }
  0x2b   :  { %v289_v43 = vunpack.c.l.s8.bf16 %v186_v38 }
  0x2c   :  { %835 = vmatpush3.bf16.msra.mxu0 %v216_v51  ;;  %v174_v51 = vld [vmem:[#allocation2 + $0xd8] sm:$0xff] }
  0x2d   :  { %857 = vmatpush3.bf16.msra.mxu1 %v232_v52  ;;  %836 = vmatprep.subr.bf16.mxu0 %v225_v53  ;;  %v81_v52 = vcombine.high %v41_v45, %v41_v45  ;;  %v249_v53 = vunpack.c.l.s8.bf16 %v166_v50  ;;  %v290_v50 = vunpack.c.h.s8.bf16 %v186_v38  ;;  %v198_v38 = vld [vmem:[#allocation2 + $0x198] sm:$0xff] }
  0x2e   :  { %858 = vmatprep.subr.bf16.mxu1 %v241_v54  ;;  %v265_v54 = vunpack.c.l.s8.bf16 %v174_v51 }
  0x2f   :  { %v1192_v60 = vrot.slane %v81_v52, %v1153_v23  ;;  %v199_v52 = vld [vmem:[#allocation2 + $0x1a0] sm:$0xff] }
  0x30   :  { %837 = vmatpush3.bf16.msra.mxu0 %v217_v58  ;;  %v191_v58 = vld [vmem:[#allocation2 + $0x160] sm:$0xff] }
  0x31   :  { %859 = vmatpush3.bf16.msra.mxu1 %v233_v59  ;;  %838 = vmatprep.subr.bf16.mxu0 %v226_v62  ;;  %v1189_v59 = vrot.slane %v41_v45, %v1153_v23  ;;  %v266_v62 = vunpack.c.h.s8.bf16 %v174_v51  ;;  %v97_v6 = vcombine.high %v1192_v60, %v1192_v60  ;;  %v182_v45 = vld [vmem:[#allocation2 + $0x118] sm:$0xff] }
  0x32   :  { %860 = vmatprep.subr.bf16.mxu1 %v242_v63  ;;  %v283_v63 = vunpack.c.l.s8.bf16 %v183_v57 }
  0x33   :  { %v142_v16 = vpack.c.bf16 %v97_v6, %v97_v6 }
  0x34   :  { %839 = vmatpush3.bf16.msra.mxu0 %v218_v2  ;;  %v299_v2 = vunpack.c.l.s8.bf16 %v191_v58 }
  0x35   :  { %861 = vmatpush3.bf16.msra.mxu1 %v234_v3  ;;  %868 = vmatprep.subr.bf16.mxu0 %v251_v4  ;;  %v179_v3 = vld [vmem:[#allocation2 + $0x100] sm:$0xff] }
  0x36   :  { %890 = vmatprep.subr.bf16.mxu1 %v267_v5  ;;  %v187_v4 = vld [vmem:[#allocation2 + $0x140] sm:$0xff]  ;;  %v96_v5 = vcombine.high %v1189_v59, %v1189_v59  ;;  %v275_v9 = vunpack.c.l.s8.bf16 %v179_v3  ;;  %v276_v0 = vunpack.c.h.s8.bf16 %v179_v3 }
  0x37   :  { %372 = vmatmul.mubr.bf16.vlgmr.msra.gmra.mrb[0].mxu0 %v131_v10  ;;  %v291_v10 = vunpack.c.l.s8.bf16 %v187_v4  ;;  %v292_v17 = vunpack.c.h.s8.bf16 %v187_v4  ;;  %v141_v4 = vpack.c.bf16 %v1192_v60, %v1192_v60 }
  0x38   :  { %412 = vmatmul.mubr.bf16.vlgmr.msra.gmra.mrb[0].mxu1 %v133_v11  ;;  %869 = vmatpush3.bf16.msra.mxu0 %v243_v12  ;;  %v284_v11 = vunpack.c.h.s8.bf16 %v183_v57  ;;  %v300_v12 = vunpack.c.h.s8.bf16 %v191_v58  ;;  %v315_v58 = vunpack.c.l.s8.bf16 %v199_v52 }
  0x39   :  { %891 = vmatpush3.bf16.msra.mxu1 %v259_v13  ;;  %870 = vmatprep.subr.bf16.mxu0 %v252_v14  ;;  %v184_v13 = vld [vmem:[#allocation2 + $0x128] sm:$0xff] }
  0x3a   :  { %892 = vmatprep.subr.bf16.mxu1 %v268_v15  ;;  %451 = vmatprep.mubr.bf16.mxu0 %v136_v18  ;;  %v192_v14 = vld [vmem:[#allocation2 + $0x168] sm:$0xff]  ;;  %v140_v15 = vpack.c.bf16 %v96_v5, %v96_v5  ;;  %v285_v1 = vunpack.c.l.s8.bf16 %v184_v13 }
  0x3b   :  { %491 = vmatprep.mubr.bf16.mxu1 %v138_v19  ;;  %v301_v18 = vunpack.c.l.s8.bf16 %v192_v14  ;;  %v180_v19 = vld [vmem:[#allocation2 + $0x108] sm:$0xff]  ;;  %v302_v25 = vunpack.c.h.s8.bf16 %v192_v14 }
  0x3c   :  { %871 = vmatpush3.bf16.msra.mxu0 %v244_v20  ;;  %v188_v20 = vld [vmem:[#allocation2 + $0x148] sm:$0xff] }
  0x3d   :  { %893 = vmatpush3.bf16.msra.mxu1 %v260_v21  ;;  %872 = vmatprep.subr.bf16.mxu0 %v253_v22  ;;  %v277_v21 = vunpack.c.l.s8.bf16 %v180_v19  ;;  %v293_v22 = vunpack.c.l.s8.bf16 %v188_v20 }
  0x3e   :  { %894 = vmatprep.subr.bf16.mxu1 %v269_v24  ;;  %v286_v24 = vunpack.c.h.s8.bf16 %v184_v13 }
  0x40   :  { %873 = vmatpush3.bf16.msra.mxu0 %v245_v27  ;;  %v193_v27 = vld [vmem:[#allocation2 + $0x170] sm:$0xff] }
  0x41   :  { %895 = vmatpush3.bf16.msra.mxu1 %v261_v28  ;;  %874 = vmatprep.subr.bf16.mxu0 %v254_v29  ;;  %v278_v28 = vunpack.c.h.s8.bf16 %v180_v19  ;;  %v294_v29 = vunpack.c.h.s8.bf16 %v188_v20  ;;  %v303_v31 = vunpack.c.l.s8.bf16 %v193_v27  ;;  %v304_v37 = vunpack.c.h.s8.bf16 %v193_v27  ;;  %v201_v19 = vld [vmem:[#allocation2 + $0x1b0] sm:$0xff] }
  0x42   :  { %896 = vmatprep.subr.bf16.mxu1 %v270_v30  ;;  %v287_v30 = vunpack.c.l.s8.bf16 %v185_v26  ;;  %v209_v20 = vld [vmem:[#allocation2 + $0x1f0] sm:$0xff] }
  0x43   :  { %v205_v27 = vld [vmem:[#allocation2 + $0x1d0] sm:$0xff] }
  0x44   :  { %875 = vmatpush3.bf16.msra.mxu0 %v246_v33  ;;  %v189_v33 = vld [vmem:[#allocation2 + $0x150] sm:$0xff] }
  0x45   :  { %897 = vmatpush3.bf16.msra.mxu1 %v262_v34  ;;  %876 = vmatprep.subr.bf16.mxu0 %v255_v35  ;;  %v279_v34 = vunpack.c.l.s8.bf16 %v181_v32  ;;  %v295_v35 = vunpack.c.l.s8.bf16 %v189_v33 }
  0x46   :  { %898 = vmatprep.subr.bf16.mxu1 %v271_v36  ;;  %v288_v36 = vunpack.c.h.s8.bf16 %v185_v26  ;;  %v197_v26 = vld [vmem:[#allocation2 + $0x190] sm:$0xff] }
  0x48   :  { %877 = vmatpush3.bf16.msra.mxu0 %v247_v39  ;;  %v194_v39 = vld [vmem:[#allocation2 + $0x178] sm:$0xff] }
  0x49   :  { %899 = vmatpush3.bf16.msra.mxu1 %v263_v40  ;;  %878 = vmatprep.subr.bf16.mxu0 %v256_v41  ;;  %v42_v40 = vld [vmem:[%s1274_s0 + $0x18] sm:$0xff]  ;;  %v280_v41 = vunpack.c.h.s8.bf16 %v181_v32  ;;  %v305_v44 = vunpack.c.l.s8.bf16 %v194_v39  ;;  %v306_v51 = vunpack.c.h.s8.bf16 %v194_v39 }
  0x4a   :  { %900 = vmatprep.subr.bf16.mxu1 %v272_v42  ;;  %v296_v42 = vunpack.c.h.s8.bf16 %v189_v33  ;;  %v202_v32 = vld [vmem:[#allocation2 + $0x1b8] sm:$0xff] }
  0x4b   :  { %v210_v33 = vld [vmem:[#allocation2 + $0x1f8] sm:$0xff] }
  0x4c   :  { %879 = vmatpush3.bf16.msra.mxu0 %v248_v46  ;;  %v190_v46 = vld [vmem:[#allocation2 + $0x158] sm:$0xff] }
  0x4d   :  { %901 = vmatpush3.bf16.msra.mxu1 %v264_v47  ;;  %880 = vmatprep.subr.bf16.mxu0 %v257_v48  ;;  %v98_v47 = vcombine.high %v42_v40, %v42_v40  ;;  %v281_v48 = vunpack.c.l.s8.bf16 %v182_v45  ;;  %v298_v57 = vunpack.c.h.s8.bf16 %v190_v46  ;;  %v206_v39 = vld [vmem:[#allocation2 + $0x1d8] sm:$0xff] }
  0x4e   :  { %902 = vmatprep.subr.bf16.mxu1 %v273_v49  ;;  %v297_v49 = vunpack.c.l.s8.bf16 %v190_v46 }
  0x50   :  { %881 = vmatpush3.bf16.msra.mxu0 %v249_v53  ;;  %v207_v53 = vld [vmem:[#allocation2 + $0x1e0] sm:$0xff] }
  0x51   :  { %903 = vmatpush3.bf16.msra.mxu1 %v265_v54  ;;  %882 = vmatprep.subr.bf16.mxu0 %v258_v55  ;;  %v1206_v54 = vrot.slane %v42_v40, %v1153_v23  ;;  %v1209_v55 = vrot.slane %v98_v47, %v1153_v23  ;;  %v139_v23 = vpack.c.bf16 %v1189_v59, %v1189_v59  ;;  %v313_v40 = vunpack.c.l.s8.bf16 %v198_v38 }
  0x52   :  { %904 = vmatprep.subr.bf16.mxu1 %v274_v56  ;;  %v282_v56 = vunpack.c.h.s8.bf16 %v182_v45  ;;  %v330_v45 = vunpack.c.h.s8.bf16 %v206_v39 }
  0x53   :  { %v114_v3 = vcombine.high %v1209_v55, %v1209_v55  ;;  %v143_v46 = vpack.c.bf16 %v1206_v54, %v1206_v54  ;;  %v145_v47 = vpack.c.bf16 %v1209_v55, %v1209_v55  ;;  %v1048_v55 = vld [vmem:[%s1277_s3 + $0x30] sm:$0xff]  }
  0x54   :  { %883 = vmatpush3.bf16.msra.mxu0 %v250_v61  ;;  %v331_v61 = vunpack.c.l.s8.bf16 %v207_v53 }
  0x55   :  { %905 = vmatpush3.bf16.msra.mxu1 %v266_v62  ;;  %912 = vmatprep.subr.bf16.mxu0 %v283_v63  ;;  %v195_v62 = vld [vmem:[#allocation2 + $0x180] sm:$0xff] }
  0x56   :  { %934 = vmatprep.subr.bf16.mxu1 %v299_v2  ;;  %v203_v63 = vld [vmem:[#allocation2 + $0x1c0] sm:$0xff]  ;;  %v113_v2 = vcombine.high %v1206_v54, %v1206_v54  ;;  %v307_v5 = vunpack.c.l.s8.bf16 %v195_v62  ;;  %v308_v59 = vunpack.c.h.s8.bf16 %v195_v62  ;;  %v1047_v54 = vld [vmem:[%s1277_s3 + $0x28] sm:$0xff]  }
  0x57   :  { %452 = vmatmul.mubr.bf16.vlgmr.msra.gmra.mrb[4].mxu0 %v135_v7  ;;  %v323_v6 = vunpack.c.l.s8.bf16 %v203_v63  ;;  %v316_v7 = vunpack.c.h.s8.bf16 %v199_v52  ;;  %v324_v13 = vunpack.c.h.s8.bf16 %v203_v63  ;;  %v1045_v52 = vld [vmem:[%s1277_s3 + $0x18] sm:$0xff]  }
  0x58   :  { %492 = vmatmul.mubr.bf16.vlgmr.msra.gmra.mrb[4].mxu1 %v137_v8  ;;  %913 = vmatpush3.bf16.msra.mxu0 %v275_v9  ;;  %v332_v8 = vunpack.c.h.s8.bf16 %v207_v53  ;;  %v200_v9 = vld [vmem:[#allocation2 + $0x1a8] sm:$0xff]  ;;  %v1046_v53 = vld [vmem:[%s1277_s3 + $0x20] sm:$0xff]  }
  0x59   :  { %935 = vmatpush3.bf16.msra.mxu1 %v291_v10  ;;  %914 = vmatprep.subr.bf16.mxu0 %v284_v11  ;;  %v208_v10 = vld [vmem:[#allocation2 + $0x1e8] sm:$0xff]  ;;  %v144_v11 = vpack.c.bf16 %v113_v2, %v113_v2  ;;  %v317_v60 = vunpack.c.l.s8.bf16 %v200_v9 }
  0x5a   :  { %936 = vmatprep.subr.bf16.mxu1 %v300_v12  ;;  %531 = vmatprep.mubr.bf16.mxu0 %v140_v15  ;;  %v146_v12 = vpack.c.bf16 %v114_v3, %v114_v3  ;;  %v333_v14 = vunpack.c.l.s8.bf16 %v208_v10  ;;  %v196_v15 = vld [vmem:[#allocation2 + $0x188] sm:$0xff] }
  0x5b   :  { %571 = vmatprep.mubr.bf16.mxu1 %v142_v16  ;;  %v204_v16 = vld [vmem:[#allocation2 + $0x1c8] sm:$0xff] }
  0x5c   :  { %915 = vmatpush3.bf16.msra.mxu0 %v276_v0  ;;  %v309_v0 = vunpack.c.l.s8.bf16 %v196_v15 }
  0x5d   :  { %937 = vmatpush3.bf16.msra.mxu1 %v292_v17  ;;  %916 = vmatprep.subr.bf16.mxu0 %v285_v1  ;;  %v325_v17 = vunpack.c.l.s8.bf16 %v204_v16  ;;  %v318_v1 = vunpack.c.h.s8.bf16 %v200_v9 }
  0x5e   :  { %938 = vmatprep.subr.bf16.mxu1 %v301_v18  ;;  %v334_v18 = vunpack.c.h.s8.bf16 %v208_v10 }
  0x60   :  { %917 = vmatpush3.bf16.msra.mxu0 %v277_v21  ;;  %v310_v21 = vunpack.c.h.s8.bf16 %v196_v15 }
  0x61   :  { %939 = vmatpush3.bf16.msra.mxu1 %v293_v22  ;;  %918 = vmatprep.subr.bf16.mxu0 %v286_v24  ;;  %v326_v22 = vunpack.c.h.s8.bf16 %v204_v16  ;;  %v319_v24 = vunpack.c.l.s8.bf16 %v201_v19 }
  0x62   :  { %940 = vmatprep.subr.bf16.mxu1 %v302_v25  ;;  %v335_v25 = vunpack.c.l.s8.bf16 %v209_v20 }
  0x64   :  { %919 = vmatpush3.bf16.msra.mxu0 %v278_v28  ;;  %v311_v28 = vunpack.c.l.s8.bf16 %v197_v26 }
  0x65   :  { %941 = vmatpush3.bf16.msra.mxu1 %v294_v29  ;;  %920 = vmatprep.subr.bf16.mxu0 %v287_v30  ;;  %v327_v29 = vunpack.c.l.s8.bf16 %v205_v27  ;;  %v320_v30 = vunpack.c.h.s8.bf16 %v201_v19 }
  0x66   :  { %942 = vmatprep.subr.bf16.mxu1 %v303_v31  ;;  %v336_v31 = vunpack.c.h.s8.bf16 %v209_v20 }
  0x68   :  { %921 = vmatpush3.bf16.msra.mxu0 %v279_v34  ;;  %v312_v34 = vunpack.c.h.s8.bf16 %v197_v26 }
  0x69   :  { %943 = vmatpush3.bf16.msra.mxu1 %v295_v35  ;;  %922 = vmatprep.subr.bf16.mxu0 %v288_v36  ;;  %v328_v35 = vunpack.c.h.s8.bf16 %v205_v27  ;;  %v321_v36 = vunpack.c.l.s8.bf16 %v202_v32 }
  0x6a   :  { %944 = vmatprep.subr.bf16.mxu1 %v304_v37  ;;  %v337_v37 = vunpack.c.l.s8.bf16 %v210_v33 }
  0x6c   :  { %923 = vmatpush3.bf16.msra.mxu0 %v280_v41  ;;  %v329_v41 = vunpack.c.l.s8.bf16 %v206_v39 }
  0x6d   :  { %945 = vmatpush3.bf16.msra.mxu1 %v296_v42  ;;  %924 = vmatprep.subr.bf16.mxu0 %v289_v43  ;;  %v322_v42 = vunpack.c.h.s8.bf16 %v202_v32  ;;  %v338_v43 = vunpack.c.h.s8.bf16 %v210_v33 }
  0x6e   :  { %946 = vmatprep.subr.bf16.mxu1 %v305_v44  ;;  %v314_v44 = vunpack.c.h.s8.bf16 %v198_v38 }
  0x70   :  { %925 = vmatpush3.bf16.msra.mxu0 %v281_v48  ;;  %v1042_v48 = vld [vmem:[%s1277_s3] sm:$0xff]  }
  0x71   :  { %947 = vmatpush3.bf16.msra.mxu1 %v297_v49  ;;  %926 = vmatprep.subr.bf16.mxu0 %v290_v50  ;;  %v1102_v49 = vmov 0.0   ;;  %v1043_v50 = vld [vmem:[%s1277_s3 + $0x8] sm:$0xff]  }
  0x72   :  { %948 = vmatprep.subr.bf16.mxu1 %v306_v51  ;;  %v1044_v51 = vld [vmem:[%s1277_s3 + $0x10] sm:$0xff]  }
  0x74   :  { %927 = vmatpush3.bf16.msra.mxu0 %v282_v56  ;;  %v1049_v56 = vld [vmem:[%s1277_s3 + $0x38] sm:$0xff]  }
  0x75   :  { %949 = vmatpush3.bf16.msra.mxu1 %v298_v57  ;;  %956 = vmatprep.subr.bf16.mxu0 %v315_v58  ;;  %v691_v57 = vld [vmem:[%s1279_s5] sm:$0x3]  ;;  %v1104_v58 = vmov 0  }
  0x76   :  { %978 = vmatprep.subr.bf16.mxu1 %v331_v61  ;;  %1037 = vset.pattern.permute.xlu0 %v1104_v58 }
  0x77   :  { %532 = vmatmul.mubr.bf16.vlgmr.msra.gmra.mrb[8].mxu0 %v139_v23  ;;  %694 = vperm.xlu0 %1037, %v691_v57  }
  0x78   :  { %572 = vmatmul.mubr.bf16.vlgmr.msra.gmra.mrb[8].mxu1 %v141_v4  ;;  %957 = vmatpush3.bf16.msra.mxu0 %v307_v5 }
  0x79   :  { %979 = vmatpush3.bf16.msra.mxu1 %v323_v6  ;;  %958 = vmatprep.subr.bf16.mxu0 %v316_v7 }
  0x7a   :  { %980 = vmatprep.subr.bf16.mxu1 %v332_v8  ;;  %611 = vmatprep.mubr.bf16.mxu0 %v144_v11 }
  0x7b   :  { %651 = vmatprep.mubr.bf16.mxu1 %v146_v12 }
  0x7c   :  { %959 = vmatpush3.bf16.msra.mxu0 %v308_v59 }
  0x7d   :  { %981 = vmatpush3.bf16.msra.mxu1 %v324_v13  ;;  %960 = vmatprep.subr.bf16.mxu0 %v317_v60 }
  0x7e   :  { %982 = vmatprep.subr.bf16.mxu1 %v333_v14 }
  0x80   :  { %961 = vmatpush3.bf16.msra.mxu0 %v309_v0 }
  0x81   :  { %983 = vmatpush3.bf16.msra.mxu1 %v325_v17  ;;  %962 = vmatprep.subr.bf16.mxu0 %v318_v1 }
  0x82   :  { %984 = vmatprep.subr.bf16.mxu1 %v334_v18 }
  0x84   :  { %963 = vmatpush3.bf16.msra.mxu0 %v310_v21 }
  0x85   :  { %985 = vmatpush3.bf16.msra.mxu1 %v326_v22  ;;  %964 = vmatprep.subr.bf16.mxu0 %v319_v24 }
  0x86   :  { %986 = vmatprep.subr.bf16.mxu1 %v335_v25 }
  0x88   :  { %965 = vmatpush3.bf16.msra.mxu0 %v311_v28 }
  0x89   :  { %987 = vmatpush3.bf16.msra.mxu1 %v327_v29  ;;  %966 = vmatprep.subr.bf16.mxu0 %v320_v30 }
  0x8a   :  { %988 = vmatprep.subr.bf16.mxu1 %v336_v31 }
  0x8c   :  { %967 = vmatpush3.bf16.msra.mxu0 %v312_v34 }
  0x8d   :  { %989 = vmatpush3.bf16.msra.mxu1 %v328_v35  ;;  %968 = vmatprep.subr.bf16.mxu0 %v321_v36 }
  0x8e   :  { %990 = vmatprep.subr.bf16.mxu1 %v337_v37 }
  0x90   :  { %969 = vmatpush3.bf16.msra.mxu0 %v313_v40 }
  0x91   :  { %991 = vmatpush3.bf16.msra.mxu1 %v329_v41  ;;  %970 = vmatprep.subr.bf16.mxu0 %v322_v42  ;;  %v812_v41 = vld [vmem:[%s1276_s2] ss:$0 sm:$0xff] }
  0x92   :  { %992 = vmatprep.subr.bf16.mxu1 %v338_v43  ;;  %v813_v43 = vld [vmem:[%s1276_s2 + $0x1] ss:$0 sm:$0xff]  ;;  %s1072_s2 = scalar_lea.vmem %s804_s17, 32 }
  0x93   :  { %p1073_p8 = scmp.ne.s32.totalorder %s804_s17, %s1072_s2  ;;  %p1078_p10 = scmp.lt.s32.totalorder %s1072_s2, %s1072_s2 }
  0x94   :  { %971 = vmatpush3.bf16.msra.mxu0 %v314_v44 }
  0x95   :  { %993 = vmatpush3.bf16.msra.mxu1 %v330_v45  ;;  %1009 = vmatprep.subr.bf16.mxu0 %v1102_v49  ;;  %p1079_p11 = por %p1078_p10, %p1077_p9 }
  0x97   :  { %612 = vmatmul.mubr.bf16.vlgmr.msra.gmra.mrb[12].mxu0 %v143_v46  ;;  %p1080_p12 = pnand %p1079_p11, %p1073_p8 }
  0x98   :  { %652 = vmatmul.mubr.bf16.vlgmr.msra.gmra.mrb[12].mxu1 %v145_v47  ;;  %1010 = vmatpush3.bf16.msra.mxu0 %v1042_v48 }
  0x99   :  { %1011 = vmatprep.subr.bf16.mxu0 %v1102_v49  ;;  %1025 = vmatprep.mubr.msk.bf16.mxu0 %vm1103_vm0, %v1102_v49 }
  0x9c   :  { %1012 = vmatpush3.bf16.msra.mxu0 %v1043_v50 }
  0x9d   :  { %1013 = vmatprep.subr.bf16.mxu0 %v1102_v49 }
  0xa0   :  { %1014 = vmatpush3.bf16.msra.mxu0 %v1044_v51  ;;  %v823_v51 = vld [vmem:[%s1278_s4 + $0x1] ss:$0 sm:$0xff] }
  0xa1   :  { %1015 = vmatprep.subr.bf16.mxu0 %v1102_v49 }
  0xa4   :  { %1016 = vmatpush3.bf16.msra.mxu0 %v1045_v52 }
  0xa5   :  { %1017 = vmatprep.subr.bf16.mxu0 %v1102_v49 }
  0xa8   :  { %1018 = vmatpush3.bf16.msra.mxu0 %v1046_v53 }
  0xa9   :  { %1019 = vmatprep.subr.bf16.mxu0 %v1102_v49 }
  0xac   :  { %1020 = vmatpush3.bf16.msra.mxu0 %v1047_v54 }
  0xad   :  { %1021 = vmatprep.subr.bf16.mxu0 %v1102_v49 }
  0xb0   :  { %1022 = vmatpush3.bf16.msra.mxu0 %v1048_v55 }
  0xb1   :  { %1023 = vmatprep.subr.bf16.mxu0 %v1102_v49  ;;  %v814_v49 = vld [vmem:[%s1278_s4] ss:$0 sm:$0xff] }
  0xb4   :  { %1024 = vmatpush3.bf16.msra.mxu0 %v1049_v56 }
  0xf6   :  { %v695_v48 = vpop.permute.xlu0 %694 }
  0xf7   :  { %v701_v50 = vmul.f32 %v814_v49, %v695_v48 }
 0x10a   :  { %v840_v61 = vpop.f32.mrb[0].mxu0 }
 0x10b   :  { %v862_v62 = vpop.f32.mrb[0].mxu1  ;;  %v841_v63 = vpop.f32.mrb[1].mxu0 }
 0x10c   :  { %v863_v2 = vpop.f32.mrb[1].mxu1  ;;  %v842_v3 = vadd.f32 %v841_v63, %v840_v61  ;;  %v843_v4 = vpop.f32.mrb[2].mxu0 }
 0x10d   :  { %v864_v23 = vadd.f32 %v863_v2, %v862_v62  ;;  %v865_v5 = vpop.f32.mrb[2].mxu1  ;;  %v844_v6 = vpop.f32.mrb[3].mxu0 }
 0x10e   :  { %v866_v7 = vpop.f32.mrb[3].mxu1 }
 0x10f   :  { %v414_v8 = vadd.f32 %v864_v23, %v842_v3 }
 0x12a   :  { %v884_v9 = vpop.f32.mrb[4].mxu0 }
 0x12b   :  { %v906_v10 = vpop.f32.mrb[4].mxu1  ;;  %v885_v11 = vpop.f32.mrb[5].mxu0 }
 0x12c   :  { %v907_v12 = vpop.f32.mrb[5].mxu1  ;;  %v886_v59 = vadd.f32 %v885_v11, %v884_v9  ;;  %v887_v60 = vpop.f32.mrb[6].mxu0 }
 0x12d   :  { %v908_v13 = vadd.f32 %v907_v12, %v906_v10  ;;  %v909_v14 = vpop.f32.mrb[6].mxu1  ;;  %v888_v15 = vpop.f32.mrb[7].mxu0 }
 0x12e   :  { %v910_v16 = vpop.f32.mrb[7].mxu1  ;;  %v454_v0 = vadd.f32 %v886_v59, %v414_v8 }
 0x130   :  { %v494_v17 = vadd.f32 %v908_v13, %v454_v0 }
 0x14a   :  { %v928_v1 = vpop.f32.mrb[8].mxu0 }
 0x14b   :  { %v950_v18 = vpop.f32.mrb[8].mxu1  ;;  %v929_v19 = vpop.f32.mrb[9].mxu0 }
 0x14c   :  { %v951_v20 = vpop.f32.mrb[9].mxu1  ;;  %v930_v21 = vadd.f32 %v929_v19, %v928_v1  ;;  %v931_v24 = vpop.f32.mrb[10].mxu0 }
 0x14d   :  { %v952_v22 = vadd.f32 %v951_v20, %v950_v18  ;;  %v953_v25 = vpop.f32.mrb[10].mxu1  ;;  %v932_v26 = vpop.f32.mrb[11].mxu0 }
 0x14e   :  { %v954_v27 = vpop.f32.mrb[11].mxu1  ;;  %v534_v28 = vadd.f32 %v930_v21, %v494_v17 }
 0x150   :  { %v574_v29 = vadd.f32 %v952_v22, %v534_v28 }
 0x16a   :  { %v972_v30 = vpop.f32.mrb[12].mxu0 }
 0x16b   :  { %v994_v31 = vpop.f32.mrb[12].mxu1  ;;  %v973_v32 = vpop.f32.mrb[13].mxu0 }
 0x16c   :  { %v995_v33 = vpop.f32.mrb[13].mxu1  ;;  %v974_v34 = vadd.f32 %v973_v32, %v972_v30  ;;  %v975_v36 = vpop.f32.mrb[14].mxu0 }
 0x16d   :  { %v996_v35 = vadd.f32 %v995_v33, %v994_v31  ;;  %v997_v37 = vpop.f32.mrb[14].mxu1  ;;  %v976_v38 = vpop.f32.mrb[15].mxu0 }
 0x16e   :  { %v998_v39 = vpop.f32.mrb[15].mxu1  ;;  %v614_v40 = vadd.f32 %v974_v34, %v574_v29 }
 0x170   :  { %v654_v42 = vadd.f32 %v996_v35, %v614_v40 }
 0x172   :  { %v665_v44 = vmul.f32 %v812_v41, %v654_v42 }
 0x174   :  { %v670_v45 = vadd.f32 %v813_v43, %v665_v44 }
 0x176   :  { %v671_v46 = vmax.f32 %v670_v45, 0.0 }
 0x178   :  { %v672_v47 = vpack.c.bf16 %v671_v46, %v671_v46 }
 0x17a   :  { %1026 = vmatmul.mubr.bf16.vlgmr.msra.gmra.mrb[16].mxu0 %v672_v47 }
 0x24d   :  { %v784_v52 = vpop.f32.mrb[16].mxu0 }
 0x24e   :  { %v785_v53 = vadd.f32 %v784_v52, %v701_v50  ;;  %v1027_v54 = vpop.f32.mrb[17].mxu0 }
 0x24f   :  { %v787_v55 = vpop.f32.mrb[18].mxu0 }
 0x250   :  { %v794_v56 = vadd.f32 %v823_v51, %v785_v53  ;;  %v1028_v57 = vpop.f32.mrb[19].mxu0 }
 0x252   :  { %796 = vst.msk [vmem:[#allocation5] sm:$0x3] %vm795_vm1, %v794_v56 }
 0x253   :  { %1083 = shalt.err (!%p1080_p12)
}
 0x254   :  { %s1084_s18 = scalar_lea.hbm %s1280_s6, 32 }
 0x255   :  { %p1085_p13 = scmp.ne.s32.totalorder %s1280_s6, %s1084_s18  ;;  %p1088_p0 = scmp.lt.u32.totalorder %s1084_s18, %s1280_s6 }
 0x257   :  { %p1090_p1 = pnand %p1088_p0, %p1085_p13 }
 0x259   :  { %1093 = shalt.err (!%p1090_p1)
}
 0x25a   :  { %806 = dma.vmem_to_hbm [thread:$0]  %s804_s17, 32, %s1280_s6, [#allocation4]  }
 0x25b   :  { %1096 = dma.done.wait [#allocation4], 32  }
 0x25c   :  { %1097 = vsyncadd [#allocation4], 4294967264 }
 0x25d   :  { %810 = vsyncpa [#allocation3], 1 }
 0x25e   :  { %811 = vsyncpa [#allocation4], 1 }

</bundles_post_ra>
